<compile_context>
chip_gen: v5e
topology: v5e:2x2
jax: 0.10.0
libtpu: 0.0.40
codegen_flags: <defaults>
</compile_context>

<pallas_src>
import functools

import numpy as np
import jax
import jax.numpy as jnp
from jax import lax
from jax.experimental import pallas as pl
from jax.experimental.pallas import tpu as pltpu

_LOG10000 = float(np.log(10000.0))
_HALF_PI = float(0.5 * np.pi)


# ----------------------------------------------------------------------------
# In-kernel sinusoidal PE (column-only terms hoisted to (1, n_cols) rows).
# ----------------------------------------------------------------------------
def _pe_col_terms(n_cols, d_model):
    """Column-only PE terms as (1, n_cols) rows.

    Column c maps to feature d = c % d_model (batch folded into lanes).
    Returns (inv_freq, phase) with pe[pos, c] = sin(pos * inv_freq[c] + phase[c]),
    matching the PyTorch table:
      pe[p, 2k]   = sin(p * exp(2k * (-ln(10000)/d_model)))
      pe[p, 2k+1] = cos(...) = sin(... + pi/2)
    """
    col = lax.broadcasted_iota(jnp.int32, (1, n_cols), 1)
    if (d_model & (d_model - 1)) == 0:          # power of two: cheap bit-and
        d = col & (d_model - 1)
    else:
        d = col % d_model
    d_even = (d & ~1).astype(jnp.float32)       # 2 * (d // 2)
    inv_freq = jnp.exp(d_even * (-_LOG10000 / float(d_model)))
    phase = (d & 1).astype(jnp.float32) * _HALF_PI
    return inv_freq, phase


def _pe_tile(row0, n_rows, inv_freq, phase, dtype, rows_per_pos=1):
    """PE values for an (n_rows, n_cols) tile whose global rows start at row0.

    Sequence position of row r is (row0 + r) // rows_per_pos (rows_per_pos=1
    for the (S, B*D) fold; =B for the (S*B, D) fold of the fused encoder).
    Per element: 1 mul + 1 add (VPU) + 1 sin (EUP).
    """
    r = row0 + lax.broadcasted_iota(jnp.int32, (n_rows, 1), 0)
    if rows_per_pos > 1:
        r = r // rows_per_pos
    pos = r.astype(jnp.float32)                 # (n_rows, 1)
    return jnp.sin(pos * inv_freq + phase).astype(dtype)


# ----------------------------------------------------------------------------
# Kernels
# ----------------------------------------------------------------------------
def _pe_add_kernel(x_ref, o_ref, *, d_model):
    # Eval mode: out = x + pe (dropout is the identity).
    inv_freq, phase = _pe_col_terms(x_ref.shape[1], d_model)
    row0 = pl.program_id(0) * x_ref.shape[0]
    pe = _pe_tile(row0, x_ref.shape[0], inv_freq, phase, x_ref.dtype)
    o_ref[...] = x_ref[...] + pe


def _pe_add_dropout_kernel(x_ref, m_ref, o_ref, *, d_model):
    # Training mode: out = (x + pe) * mask, mask already holds keep/(1-p).
    inv_freq, phase = _pe_col_terms(x_ref.shape[1], d_model)
    row0 = pl.program_id(0) * x_ref.shape[0]
    pe = _pe_tile(row0, x_ref.shape[0], inv_freq, phase, x_ref.dtype)
    o_ref[...] = (x_ref[...] + pe) * m_ref[...]


def _encoder_pe_kernel(x_ref, w_ref, b_ref, o_ref, *, d_model, batch):
    # Fused nn.Linear(input_size, d_model) + PE add (eval-mode dropout).
    # Rows are the (seq, batch) pairs flattened as s*batch + b.
    inv_freq, phase = _pe_col_terms(d_model, d_model)
    row0 = pl.program_id(0) * x_ref.shape[0]
    pe = _pe_tile(row0, x_ref.shape[0], inv_freq, phase, jnp.float32,
                  rows_per_pos=batch)
    y = jnp.dot(x_ref[...], w_ref[...],
                preferred_element_type=jnp.float32,
                precision=lax.Precision.HIGHEST)
    y = y + b_ref[...].astype(jnp.float32) + pe
    o_ref[...] = y.astype(o_ref.dtype)


# ----------------------------------------------------------------------------
# Row-tile selection (no pad/slice pass; VMEM-budget clamped; dtype-aware).
# ----------------------------------------------------------------------------
def _pick_rows(total_rows, bytes_per_row, *, align, vmem_limit_bytes, n_streams,
               target_bytes=4 * 1024 * 1024, prefer_split=True, override=None):
    """Pick a row-tile size that always divides total_rows.

    - sublane alignment is dtype-aware (align = 8/16/32 for 4/2/1-byte dtypes)
    - n_streams double-buffered tiles are clamped to ~80% of vmem_limit_bytes
    - when possible the tile is capped at total_rows//2 so the grid has >= 2
      parallel steps (keeps both v7x TensorCores busy; neutral on v5e/v6e)
    """
    if override is not None:
        t = int(override)
        if 0 < t <= total_rows and total_rows % t == 0:
            return t
    budget = (vmem_limit_bytes * 4 // 5) // (2 * n_streams)   # double-buffered
    tile_bytes = min(target_bytes, budget)
    max_rows = max(align, (tile_bytes // max(1, bytes_per_row)) // align * align)
    bound = min(total_rows, max_rows)
    if prefer_split and total_rows >= 2 * align:
        bound = min(bound, max(align, (total_rows // 2) // align * align))
    best = None
    for cand in range(align, bound + 1, align):
        if total_rows % cand == 0:
            best = cand
    if best is not None:
        return best
    # No sublane-aligned divisor within budget: use the full extent (a
    # full-extent block is always layout-legal).
    # TODO(synk): masked ragged-last-tile path for huge non-divisible lengths.
    return total_rows


def _sublane_align(dtype):
    itemsize = jnp.dtype(dtype).itemsize
    return max(8, 32 // itemsize)               # f32: 8, bf16: 16, int8/fp8: 32


# ----------------------------------------------------------------------------
# Wrappers
# ----------------------------------------------------------------------------
def positional_encoding(x, *, max_len=5000, dropout_rate=0.1, training=False,
                        rng_key=None, block_rows=None,
                        vmem_limit_bytes=32 * 1024 * 1024):
    """PositionalEncoding.forward for x of shape (seq_len, batch, d_model).

    Eval mode (default): x + pe[:seq_len], exactly like the PyTorch module in
    eval() (dropout == identity).  Training mode: inverted dropout fused into
    the same HBM pass via a precomputed keep/(1-p) scale mask.
    Note: PE is computed in f32 and cast to x.dtype before the add; for bf16
    inputs this differs from PyTorch (which adds an f32 buffer) at ~bf16 ulp.
    """
    S, B, D = x.shape
    if S > max_len:
        raise ValueError(f"seq_len {S} exceeds max_len {max_len} of the PE table")

    BD = B * D                                   # lane-dense fold; multiple of 128
    itemsize = jnp.dtype(x.dtype).itemsize       # for realistic shapes (B*64 here)
    align = _sublane_align(x.dtype)
    use_dropout = bool(training) and dropout_rate > 0.0
    n_streams = 3 if use_dropout else 2          # x (+mask) + out

    tS = _pick_rows(S, BD * itemsize, align=align, vmem_limit_bytes=vmem_limit_bytes,
                    n_streams=n_streams, override=block_rows)
    grid = (S // tS,)

    x2 = x.reshape(S, BD)
    spec = pl.BlockSpec((tS, BD), lambda i: (i, 0))
    cparams = pltpu.CompilerParams(
        dimension_semantics=("parallel",),       # independent row tiles
        vmem_limit_bytes=vmem_limit_bytes,
    )
    out_shape = jax.ShapeDtypeStruct((S, BD), x.dtype)

    if not use_dropout:
        out2 = pl.pallas_call(
            functools.partial(_pe_add_kernel, d_model=D),
            grid=grid,
            in_specs=[spec],
            out_specs=spec,
            out_shape=out_shape,
            compiler_params=cparams,
            input_output_aliases={0: 0},         # in-place update of x
        )(x2)
    else:
        if rng_key is None:
            rng_key = jax.random.PRNGKey(0)
        keep = jax.random.bernoulli(rng_key, 1.0 - float(dropout_rate), (S, BD))
        mask = keep.astype(x.dtype) * jnp.asarray(1.0 / (1.0 - float(dropout_rate)),
                                                  dtype=x.dtype)
        out2 = pl.pallas_call(
            functools.partial(_pe_add_dropout_kernel, d_model=D),
            grid=grid,
            in_specs=[spec, spec],
            out_specs=spec,
            out_shape=out_shape,
            compiler_params=cparams,
            input_output_aliases={0: 0},
        )(x2, mask)

    return out2.reshape(S, B, D)


def encode_with_positional_encoding(x_in, w, b, *, max_len=5000, block_rows=None,
                                    vmem_limit_bytes=32 * 1024 * 1024):
    """Fused encoder nn.Linear + PositionalEncoding add (eval-mode dropout).

    x_in: (seq_len, batch, input_size); w: (input_size, d_model) (torch weight.T);
    b: (d_model,).  Returns (seq_len, batch, d_model) = x_in @ w + b + pe[:seq_len].
    This folds the PE add into the matmul epilogue (one HBM pass), removing the
    standalone PE pass entirely.
    """
    S, B, K = x_in.shape
    Kw, D = w.shape
    if Kw != K:
        raise ValueError(f"weight shape {w.shape} does not match input_size {K}")
    if S > max_len:
        raise ValueError(f"seq_len {S} exceeds max_len {max_len} of the PE table")

    M = S * B
    itemsize = jnp.dtype(x_in.dtype).itemsize
    align = _sublane_align(x_in.dtype)
    tm = _pick_rows(M, (K + D) * itemsize, align=align,
                    vmem_limit_bytes=vmem_limit_bytes, n_streams=2,
                    override=block_rows)
    grid = (M // tm,)

    x2 = x_in.reshape(M, K)
    b2 = b.reshape(1, D)
    out2 = pl.pallas_call(
        functools.partial(_encoder_pe_kernel, d_model=D, batch=B),
        grid=grid,
        in_specs=[pl.BlockSpec((tm, K), lambda i: (i, 0)),
                  pl.BlockSpec((K, D), lambda i: (0, 0)),
                  pl.BlockSpec((1, D), lambda i: (0, 0))],
        out_specs=pl.BlockSpec((tm, D), lambda i: (i, 0)),
        out_shape=jax.ShapeDtypeStruct((M, D), x_in.dtype),
        compiler_params=pltpu.CompilerParams(
            dimension_semantics=("parallel",),
            vmem_limit_bytes=vmem_limit_bytes),
    )(x2, w, b2)
    return out2.reshape(S, B, D)


# ----------------------------------------------------------------------------
# Pure numpy reference (identical construction to the PyTorch module).
# ----------------------------------------------------------------------------
def _ref_pos_encoding(x_np, max_len=5000):
    S, B, D = x_np.shape
    pos = np.arange(max_len, dtype=np.float32)[:, None]
    div = np.exp(np.arange(0, D, 2, dtype=np.float32) * (-np.log(10000.0) / D))
    pe = np.zeros((max_len, D), dtype=np.float32)
    pe[:, 0::2] = np.sin(pos * div)
    pe[:, 1::2] = np.cos(pos * div)
    return x_np + pe[:S][:, None, :]


if __name__ == "__main__":
    # Shapes implied by TransformerModel defaults: d_model=64 (nhead=4); small
    # seq/batch/input_size.  B*d_model = 256 keeps the PE kernel lane-dense.
    seq_len, batch, d_model, input_size = 32, 4, 64, 16

    key = jax.random.PRNGKey(0)
    k_x, k_in, k_w, k_b, k_drop = jax.random.split(key, 5)

    # ---- PositionalEncoding, eval mode (auto tiles: 16-row tiles, 2-step grid)
    x = jax.random.normal(k_x, (seq_len, batch, d_model), dtype=jnp.float32)
    ref = _ref_pos_encoding(np.asarray(x))
    out = np.asarray(jax.block_until_ready(positional_encoding(x)))
    np.testing.assert_allclose(out, ref, rtol=1e-5, atol=2e-5)

    # ---- Forced 8-row tiles -> 4-step pipelined grid
    out8 = np.asarray(jax.block_until_ready(positional_encoding(x, block_rows=8)))
    np.testing.assert_allclose(out8, ref, rtol=1e-5, atol=2e-5)

    # ---- Training mode: fused inverted dropout via precomputed scale mask
    p = 0.1
    out_tr = np.asarray(jax.block_until_ready(
        positional_encoding(x, training=True, dropout_rate=p, rng_key=k_drop)))
    keep = np.asarray(jax.random.bernoulli(k_drop, 1.0 - p,
                                           (seq_len, batch * d_model)))
    keep = keep.reshape(seq_len, batch, d_model)
    expect = np.where(keep, ref / (1.0 - p), 0.0)
    np.testing.assert_allclose(out_tr, expect, rtol=1e-5, atol=2e-5)

    # ---- Fused encoder Linear + PE add (matmul epilogue fusion)
    x_in = jax.random.normal(k_in, (seq_len, batch, input_size), dtype=jnp.float32)
    w = jax.random.normal(k_w, (input_size, d_model), dtype=jnp.float32) * 0.1
    b = jax.random.normal(k_b, (d_model,), dtype=jnp.float32) * 0.1
    enc = np.asarray(jax.block_until_ready(
        encode_with_positional_encoding(x_in, w, b)))
    lin = np.asarray(x_in).reshape(-1, input_size) @ np.asarray(w) + np.asarray(b)
    enc_ref = _ref_pos_encoding(lin.reshape(seq_len, batch, d_model))
    np.testing.assert_allclose(enc, enc_ref, rtol=1e-4, atol=1e-4)

    print("KERNEL_OK")
</pallas_src>

<mosaic_0001>
module attributes {stable_mosaic.version = 11 : i64} {
  func.func @_pe_add_kernel(%arg0: i32, %arg1: memref<16x256xf32, #tpu.memory_space<vmem>>, %arg2: memref<16x256xf32, #tpu.memory_space<vmem>>) attributes {dimension_semantics = [#tpu.dimension_semantics<parallel>], iteration_bounds = array<i64: 2>, scalar_prefetch = 0 : i64, scratch_operands = 0 : i64, tpu.core_type = #tpu.core_type<tc>, window_params = [{transform_indices = @transform_0, window_bounds = array<i64: 16, 256>}, {transform_indices = @transform_1, window_bounds = array<i64: 16, 256>}]} {
    %0 = tpu.iota {dimensions = array<i32: 1>} : vector<1x256xi32>
    %c63_i32 = arith.constant 63 : i32
    %1 = vector.broadcast %c63_i32 : i32 to vector<1x256xi32>
    %2 = arith.andi %0, %1 : vector<1x256xi32>
    %c-2_i32 = arith.constant -2 : i32
    %3 = vector.broadcast %c-2_i32 : i32 to vector<1x256xi32>
    %4 = arith.andi %2, %3 : vector<1x256xi32>
    %5 = arith.sitofp %4 : vector<1x256xi32> to vector<1x256xf32>
    %cst = arith.constant -0.14391157 : f32
    %6 = vector.broadcast %cst : f32 to vector<1x256xf32>
    %7 = arith.mulf %5, %6 : vector<1x256xf32>
    %8 = math.exp %7 : vector<1x256xf32>
    %c1_i32 = arith.constant 1 : i32
    %9 = vector.broadcast %c1_i32 : i32 to vector<1x256xi32>
    %10 = arith.andi %2, %9 : vector<1x256xi32>
    %11 = arith.sitofp %10 : vector<1x256xi32> to vector<1x256xf32>
    %cst_0 = arith.constant 1.57079637 : f32
    %12 = vector.broadcast %cst_0 : f32 to vector<1x256xf32>
    %13 = arith.mulf %11, %12 : vector<1x256xf32>
    %c16_i32 = arith.constant 16 : i32
    %14 = arith.muli %arg0, %c16_i32 : i32
    %15 = tpu.iota {dimensions = array<i32: 0>} : vector<16x1xi32>
    %16 = vector.broadcast %14 : i32 to vector<16x1xi32>
    %17 = arith.addi %16, %15 : vector<16x1xi32>
    %18 = arith.sitofp %17 : vector<16x1xi32> to vector<16x1xf32>
    %19 = vector.broadcast %18 : vector<16x1xf32> to vector<16x256xf32>
    %20 = vector.broadcast %8 : vector<1x256xf32> to vector<16x256xf32>
    %21 = arith.mulf %19, %20 : vector<16x256xf32>
    %22 = vector.broadcast %13 : vector<1x256xf32> to vector<16x256xf32>
    %23 = arith.addf %21, %22 : vector<16x256xf32>
    %24 = math.sin %23 : vector<16x256xf32>
    %c0 = arith.constant 0 : index
    %c0_1 = arith.constant 0 : index
    %25 = vector.load %arg1[%c0, %c0_1] : memref<16x256xf32, #tpu.memory_space<vmem>>, vector<16x256xf32>
    %26 = arith.addf %25, %24 : vector<16x256xf32>
    %c0_2 = arith.constant 0 : index
    %c0_3 = arith.constant 0 : index
    %27 = vector.load %arg2[%c0_2, %c0_3] : memref<16x256xf32, #tpu.memory_space<vmem>>, vector<16x256xf32>
    tpu.vector_store %arg2[%c0_2, %c0_3], %26 {strides = array<i32>} : memref<16x256xf32, #tpu.memory_space<vmem>>, vector<16x256xf32>,
    return
  }
  func.func @transform_0(%arg0: i32) -> (i32, i32) {
    %c0_i32 = arith.constant 0 : i32
    %c0_i32_0 = arith.constant 0 : i32
    return %arg0, %c0_i32 : i32, i32
  }
  func.func @transform_1(%arg0: i32) -> (i32, i32) {
    %c0_i32 = arith.constant 0 : i32
    %c0_i32_0 = arith.constant 0 : i32
    return %arg0, %c0_i32 : i32, i32
  }
}

</mosaic_0001>

<bundles_post_ra>
// kernel: tpu_custom_call.1
= control target key start
LH: loop header
LB: loop body
LE: loop exit
PB: predicated region body
PF: predicated region fallthrough
CT: control target
= control target key end

     0   :  { %6 = vsyncpa [#allocation3], 0  ;;  %s1708_s0 = inlined_call_operand.hbm [shape: f32[32,256], index: 0, kind: input, shape index: {}, may-alias: {0,1}]   ;;  %s1709_s1 = inlined_call_operand.hbm [shape: f32[32,256], index: 1, kind: output, shape index: {}, may-alias: {0,1}]  }
   0x1   :  { %8 = vsyncpa [#allocation3 + $0x1], 0 }
   0x2   :  { %9 = vsyncpa [#allocation4], 0 }
   0x3   :  { %11 = vsyncpa [#allocation4 + $0x1], 0  ;;  %s1113_s6 = smov 0   ;;  %s1115_s7 = smov 0  }
   0x4   :  { %s1117_s8 = smov 0   ;;  %s1119_s9 = smov 0  }
   0x5 LB: > { %s1134_s10 = sadd.s32 4294967295, %s1090_s9   ;;  %s900_s11 = sadd.s32 4294967294, %s1090_s9   ;;  %s1090_s9 = sphi %s1119_s9, %s1725_s9   ;;  %s1086_s8 = sphi %s1117_s8, %s1724_s8   ;;  %s1082_s7 = sphi %s1115_s7, %s1723_s7   ;;  %s1078_s6 = sphi %s1113_s6, %s1722_s6  }
   0x6   : > { %s1138_s12 = sadd.s32 1, %s1090_s9   ;;  %s24_s13 = sadd.s32 1, %s1086_s8 }
   0x7   : > { %s21_s14 = ssub.s32 %s1090_s9, %s1138_s12  ;;  %p31_p0 = scmp.ne.s32.totalorder %s1086_s8, %s1082_s7 }
   0x8   : > { %p22_p1 = scmp.eq.s32.totalorder %s21_s14, 0  ;;  %p32_p2 = scmp.eq.s32.totalorder %s1090_s9, 0 }
   0x9   : > { %p37_p3 = scmp.ne.s32.totalorder %s1082_s7, %s1078_s6  ;;  %p38_p4 = scmp.eq.s32.totalorder %s1134_s10, 0 }
   0xa   : > { %s1150_s15 = scalar_select %p22_p1, %s1086_s8, %s24_s13  }
   0xb   : > { %p1152_p5 = por %p32_p2, %p31_p0  ;;  %p1156_p6 = por %p38_p4, %p37_p3 }
   0xc   : > { %p61_p7 = scmp.eq.s32.totalorder %s1134_s10, 1  ;;  %p67_p8 = scmp.eq.s32.totalorder %s900_s11, 1 }
   0xd   : > { %p945_p10 = scmp.lt.s32.totalorder %s1090_s9, 2  ;;  %s87_s20 = sand.u32 1, %s1086_s8  }
   0xe   : > { %p1163_p11 = por %p61_p7, %p31_p0  ;;  %p1167_p12 = por %p67_p8, %p37_p3 }
   0xf   : > { %s930_s21 = sshll.u32 %s1090_s9, 5  ;;  %s903_s22 = sshll.u32 %s87_s20, 5 }
  0x10   : > { %s97_s25 = scalar_lea.hbm %s1708_s0, %s930_s21  ;;  %s91_s27 = scalar_lea.vmem [#allocation2], %s903_s22 }
  0x11   : > { %s98_s26 = sshll.u32 %s97_s25, 4  ;;  %s100_s28 = sshll.u32 %s91_s27, 4  ;;  %s99_s26 = int_to_ptr.hbm [resolvable:$true] %s98_s26  ;;  %s101_s28 = int_to_ptr.vmem [resolvable:$true] %s100_s28 }
  0x12   : > { %p1178_p13 = pnand %p945_p10, %p1152_p5  ;;  %p907_p0 = scmp.ge.s32.totalorder %s1090_s9, 1 }
  0x13   : > { %p108_p1 = scmp.lt.s32.totalorder %s1090_s9, 3  ;;  %s88_s30 = scalar_lea.sflag [#allocation3], %s87_s20 }
  0x14   : > { %s994_s2 = sshra.s32 %s99_s26, 4  ;;  %p998_p3 = pneg %p1178_p13  ;;  %s995_s2 = int_to_ptr.hbm [resolvable:$true] %s994_s2 }
  0x15   : > { %s996_s3 = scalar_lea.hbm %s995_s2, 32  ;;  %s1001_s11 = scalar_lea.hbm %s1708_s0, 64 }
  0x16   : > { %p997_p2 = scmp.ne.s32.totalorder %s995_s2, %s996_s3  ;;  %p1002_p5 = scmp.lt.s32.totalorder %s995_s2, %s1708_s0 }
  0x17   : > { %p1003_p8 = scmp.lt.s32.totalorder %s1001_s11, %s996_s3 }
  0x18   : > { %p999_p4 = pnand %p998_p3, %p997_p2 }
  0x19   : > { %p1004_p10 = por %p1003_p8, %p1002_p5 }
  0x1a   : > { %p1000_p7 = pneg %p999_p4 }
  0x1c   : > { %p1005_p9 = pnand %p1004_p10, %p1000_p7 }
  0x1e   : > { %1008 = shalt.err (!%p1005_p9)
}
  0x1f   : > { %s1092_s16 = smov 256   ;;  %s1093_s20 = smov 16  }
  0x20   : > { %940 = dma.hbm_to_vmem [thread:$0]  (!%p1178_p13), %s99_s26, 512, %s101_s28, %s88_s30, %s1092_s16, %s1092_s16, %s1093_s20  }
  0x21   : > { %p109_p2 = pnand %p907_p0, %p108_p1 }
  0x22   : > { %s1199_s21 = sand.u32 (!%p109_p2), 1, %s1082_s7  }
  0x23   : > { %112 = sbr.rel (%p109_p2) target bundleno = 256 (0x100), region = 24  ;;  %s908_s22 = sshll.u32 (!%p109_p2), %s1199_s21, 5 }
  0x24   : > { %s115_s23 = scalar_lea.sflag (!%p109_p2), [#allocation3], %s1199_s21  ;;  %s1205_s24 = scalar_lea.vmem (!%p109_p2), [#allocation2], %s908_s22 }
  0x28   : > { %1069 = dma.done.wait (%p1156_p6), %s115_s23, 512  }
  0x29   : > { %1071 = vsyncadd (%p1156_p6), %s115_s23, 4294966784  ;;  %v140_v0 = vlaneseq  ;;  %s910_s25 = sshll.u32 %s1134_s10, 4  ;;  %v1094_v57 = vmov 683565275   ;;  %v1095_v59 = vmov 2475754826  }
  0x2a   : > { %v165_v12 = vstv %s910_s25  ;;  %v1096_v61 = vmov 2131351028   ;;  %v1097_v63 = vmov 2102212464   ;;  %s1660_s17 = scalar_lea.vmem [#allocation5], %s908_s22  ;;  %s932_s26 = sshll.u32 %s1134_s10, 5 }
  0x2b   : > { %v141_v1 = vand.u32 127, %v140_v0  ;;  %v163_v4 = vshrl.u32 %v140_v0, 7  ;;  %s823_s29 = scalar_lea.hbm %s1709_s1, %s932_s26  ;;  %s824_s30 = sshll.u32 %s1660_s17, 4  ;;  %s825_s30 = int_to_ptr.vmem [resolvable:$true] %s824_s30 }
  0x2c   : > { %s826_s10 = sshll.u32 %s823_s29, 4  ;;  %s811_s2 = scalar_lea.sflag [#allocation4], %s1199_s21  ;;  %s827_s10 = int_to_ptr.hbm [resolvable:$true] %s826_s10 }
  0x2d   : > { %v142_v2 = vadd.s32 128, %v141_v1  ;;  %v143_v3 = vand.u32 63, %v141_v1  ;;  %v164_v9 = vadd.s32 8, %v163_v4  ;;  %v166_v17 = vadd.s32 %v165_v12, %v163_v4  ;;  %s1038_s3 = sshra.s32 %s827_s10, 4  ;;  %s1044_s13 = scalar_lea.hbm %s1709_s1, 64  ;;  %s1039_s3 = int_to_ptr.hbm [resolvable:$true] %s1038_s3 }
  0x2e   : > { %v1098_v1 = vmov 920167782   ;;  %s1040_s4 = scalar_lea.hbm %s1039_s3, 32  ;;  %p1045_p0 = scmp.lt.s32.totalorder %s1039_s3, %s1709_s1 }
  0x2f   : > { %v144_v5 = vand.u32 63, %v142_v2  ;;  %v145_v6 = vand.u32 4294967294, %v143_v3  ;;  %v155_v13 = vand.u32 1, %v143_v3  ;;  %v1212_v18 = vadd.s32 %v165_v12, %v164_v9  ;;  %p1041_p6 = scmp.ne.s32.totalorder %s1039_s3, %s1040_s4  ;;  %p1046_p1 = scmp.lt.s32.totalorder %s1044_s13, %s1040_s4 }
  0x30   : > { %v168_v22 = vcvt.s32.f32 %v166_v17 }
  0x31   : > { %v146_v7 = vand.u32 4294967294, %v144_v5  ;;  %v147_v8 = vcvt.s32.f32 %v145_v6  ;;  %v156_v16 = vand.u32 1, %v144_v5  ;;  %v157_v20 = vcvt.s32.f32 %v155_v13  ;;  %p1042_p9 = pnand %p1041_p6, %p1163_p11  ;;  %p1047_p3 = por %p1046_p1, %p1045_p0 }
  0x32   : > { %v169_v23 = vcvt.s32.f32 %v1212_v18 }
  0x33   : > { %v148_v10 = vcvt.s32.f32 %v146_v7  ;;  %v149_v11 = vmul.f32 -0.14391157, %v147_v8  ;;  %v158_v21 = vcvt.s32.f32 %v156_v16  ;;  %v159_v24 = vmul.f32 1.5707964, %v157_v20  ;;  %p1043_p13 = pneg %p1042_p9 }
  0x35   : > { %v150_v14 = vmul.f32 -0.14391157, %v148_v10  ;;  %v151_v15 = vmul.f32 1.442695, %v149_v11  ;;  %v1215_v26 = vmul.f32 1.5707964, %v158_v21  ;;  %p1048_p4 = pnand %p1047_p3, %p1043_p13 }
  0x36   : > { %v1099_v10 = vmov 1326507024  }
  0x37   : > { %990 = vpow2.f32 %v151_v15  ;;  %v153_v19 = vmul.f32 1.442695, %v150_v14 }
  0x39   : > { %992 = vpow2.f32 %v153_v19 }
  0x3d   : > { %v991_v25 = vpop.eup %990 }
  0x3e   : > { %v170_v27 = vmul.f32 %v991_v25, %v168_v22  ;;  %v172_v28 = vmul.f32 %v991_v25, %v169_v23 }
  0x3f   : > { %v1219_v29 = vpop.eup %992 }
  0x40   : > { %v171_v30 = vmul.f32 %v1219_v29, %v168_v22  ;;  %v1222_v31 = vadd.f32 %v170_v27, %v159_v24  ;;  %v1224_v32 = vadd.f32 %v172_v28, %v159_v24 }
  0x42   : > { %v1227_v33 = vadd.f32 %v171_v30, %v1215_v26  ;;  %v178_v34 = vand.u32 2147483647, %v1222_v31  ;;  %v181_v35 = vand.u32 2139095040, %v1222_v31  ;;  %v491_v36 = vand.u32 2139095040, %v1224_v32 }
  0x44   : > { %v185_v37 = vand.u32 8388607, %v178_v34  ;;  %v182_v38 = vshrl.u32 %v181_v35, 23  ;;  %v336_v39 = vand.u32 2139095040, %v1227_v33  ;;  %v333_v40 = vand.u32 2147483647, %v1227_v33 }
  0x45   : > { %v492_v41 = vshrl.u32 %v491_v36, 23 }
  0x46   : > { %v911_v42 = vadd.s32 4294967169, %v182_v38  ;;  %v337_v43 = vshrl.u32 %v336_v39, 23  ;;  %v186_v44 = vor.u32 8388608, %v185_v37  ;;  %v340_v47 = vand.u32 8388607, %v333_v40 }
  0x47   : > { %v917_v48 = vadd.s32 4294967169, %v492_v41 }
  0x48   : > { %v188_v45 = vadd.s32 1, %v911_v42  ;;  %v914_v46 = vadd.s32 4294967169, %v337_v43  ;;  %v1238_v51 = vshll.u32 %v186_v44, 8  ;;  %v341_v54 = vor.u32 8388608, %v340_v47 }
  0x49   : > { %v1240_v55 = vadd.s32 1, %v917_v48 }
  0x4a   : > { %vm189_vm0 = vcmp.gt.s32.totalorder %v188_v45, 0  ;;  %v343_v49 = vadd.s32 1, %v914_v46  ;;  %v227_v3 = vand.u32 65535, %v1238_v51  ;;  %v228_v36 = vshrl.u32 %v1238_v51, 16 }
  0x4b   : > { %v190_v50 = vsel %vm189_vm0, %v188_v45, 0  ;;  %v1261_v37 = vshll.u32 %v341_v54, 8  ;;  %vm499_vm6 = vcmp.gt.s32.totalorder %v1240_v55, 0 }
  0x4c   : > { %v192_v52 = vand.u32 31, %v190_v50  ;;  %vm344_vm1 = vcmp.gt.s32.totalorder %v343_v49, 0  ;;  %v191_v53 = vshrl.u32 %v190_v50, 5 }
  0x4d   : > { %v345_v4 = vsel %vm344_vm1, %v343_v49, 0 }
  0x4e   : > { %v193_v56 = vsub.s32 32, %v192_v52  ;;  %v195_v58 = vshll.u32 %v1094_v57, %v192_v52  ;;  %v198_v60 = vshll.u32 %v1095_v59, %v192_v52  ;;  %v201_v62 = vshll.u32 %v1096_v61, %v192_v52 }
  0x4f   : > { %v204_v0 = vshll.u32 %v1097_v63, %v192_v52  ;;  %v207_v2 = vshll.u32 %v1098_v1, %v192_v52  ;;  %vm210_vm2 = vcmp.lt.s32.totalorder %v191_v53, 1  ;;  %vm211_vm3 = vcmp.lt.s32.totalorder %v191_v53, 2 }
  0x50   : > { %v194_v5 = vshrl.u32 %v1094_v57, %v193_v56  ;;  %v196_v6 = vshrl.u32 %v1095_v59, %v193_v56  ;;  %v199_v7 = vshrl.u32 %v1096_v61, %v193_v56  ;;  %v202_v8 = vshrl.u32 %v1097_v63, %v193_v56 }
  0x51   : > { %v205_v9 = vshrl.u32 %v1098_v1, %v193_v56  ;;  %v208_v11 = vshrl.u32 %v1099_v10, %v193_v56  ;;  %vm213_vm4 = vcmp.lt.s32.totalorder %v191_v53, 4  ;;  %vm212_vm5 = vcmp.lt.s32.totalorder %v191_v53, 3 }
  0x52   : > { %v197_v12 = vor.u32 %v196_v6, %v195_v58  ;;  %v200_v13 = vor.u32 %v199_v7, %v198_v60  ;;  %v203_v14 = vor.u32 %v202_v8, %v201_v62  ;;  %v1255_v17 = vand.u32 31, %v345_v4 }
  0x53   : > { %v206_v15 = vor.u32 %v205_v9, %v204_v0  ;;  %v209_v16 = vor.u32 %v208_v11, %v207_v2  ;;  %v1268_v42 = vshrl.u32 %v345_v4, 5 }
  0x54   : > { %v214_v19 = vsel %vm210_vm2, %v194_v5, %v197_v12  ;;  %v215_v20 = vsel %vm213_vm4, %v203_v14, 2102212464  ;;  %v218_v21 = vsel %vm210_vm2, %v197_v12, %v200_v13  ;;  %v222_v22 = vsel %vm210_vm2, %v200_v13, %v203_v14 }
  0x55   : > { %v216_v24 = vsel %vm212_vm5, %v200_v13, %v215_v20  ;;  %v219_v25 = vsel %vm213_vm4, %v206_v15, 920167782  ;;  %v223_v27 = vsel %vm213_vm4, %v209_v16, 1326507024  ;;  %v1258_v28 = vsub.s32 32, %v1255_v17 }
  0x56   : > { %v220_v30 = vsel %vm212_vm5, %v203_v14, %v219_v25  ;;  %v224_v35 = vsel %vm212_vm5, %v206_v15, %v223_v27  ;;  %v1264_v38 = vsel %vm211_vm3, %v214_v19, %v216_v24  ;;  %v350_v47 = vshll.u32 %v1094_v57, %v1255_v17 }
  0x57   : > { %v221_v39 = vsel %vm211_vm3, %v218_v21, %v220_v30  ;;  %v225_v41 = vsel %vm211_vm3, %v222_v22, %v224_v35  ;;  %v351_v48 = vshrl.u32 %v1095_v59, %v1258_v28  ;;  %v353_v49 = vshll.u32 %v1095_v59, %v1255_v17 }
  0x58   : > { %v229_v43 = vand.u32 65535, %v225_v41  ;;  %v230_v44 = vshrl.u32 %v225_v41, 16  ;;  %v251_v45 = vand.u32 65535, %v221_v39  ;;  %v252_v46 = vshrl.u32 %v221_v39, 16 }
  0x59   : > { %v354_v50 = vshrl.u32 %v1096_v61, %v1258_v28  ;;  %v356_v56 = vshll.u32 %v1096_v61, %v1255_v17  ;;  %v1281_v14 = vor.u32 %v351_v48, %v350_v47  ;;  %v1100_v15 = vmov 0  }
  0x5a   : > { %v231_v52 = vmul.u32 %v229_v43, %v227_v3  ;;  %v232_v53 = vmul.u32 %v230_v44, %v227_v3  ;;  %v233_v54 = vmul.u32 %v229_v43, %v228_v36  ;;  %v234_v58 = vmul.u32 %v230_v44, %v228_v36 }
  0x5b   : > { %v253_v60 = vmul.u32 %v251_v45, %v227_v3  ;;  %v254_v62 = vmul.u32 %v252_v46, %v227_v3  ;;  %v255_v0 = vmul.u32 %v251_v45, %v228_v36  ;;  %v256_v6 = vmul.u32 %v252_v46, %v228_v36 }
  0x5c   : > { %v235_v2 = vshll.u32 %v232_v53, 16  ;;  %v236_v4 = vshrl.u32 %v232_v53, 16  ;;  %v237_v5 = vshll.u32 %v233_v54, 16  ;;  %v238_v7 = vshrl.u32 %v233_v54, 16 }
  0x5d   : > { %v257_v8 = vshll.u32 %v254_v62, 16  ;;  %v258_v9 = vshrl.u32 %v254_v62, 16  ;;  %v259_v11 = vshll.u32 %v255_v0, 16  ;;  %v260_v13 = vshrl.u32 %v255_v0, 16 }
  0x5e   : > { %vm239_vm7 = vc.u32 %v231_v52, %v235_v2  ;;  %v241_v12 = vadd.s32 %v235_v2, %v231_v52  ;;  %v357_v19 = vshrl.u32 %v1097_v63, %v1258_v28  ;;  %v359_v22 = vshll.u32 %v1097_v63, %v1255_v17 }
  0x5f   : > { %v240_v16 = vsel %vm239_vm7, 1, %v1100_v15  ;;  %vm261_vm8 = vc.u32 %v253_v60, %v257_v8  ;;  %v263_v3 = vadd.s32 %v257_v8, %v253_v60  ;;  %v1290_v27 = vor.u32 %v354_v50, %v353_v49 }
  0x60   : > { %v242_v20 = vadd.s32 %v240_v16, %v234_v58  ;;  %vm243_vm9 = vc.u32 %v241_v12, %v237_v5  ;;  %v262_v21 = vsel %vm261_vm8, 1, %v1100_v15  ;;  %v358_v36 = vor.u32 %v357_v19, %v356_v56 }
  0x61   : > { %v244_v24 = vsel %vm243_vm9, 1, %v1100_v15  ;;  %v264_v25 = vadd.s32 %v262_v21, %v256_v6  ;;  %vm265_vm10 = vc.u32 %v263_v3, %v259_v11  ;;  %v360_v39 = vshrl.u32 %v1098_v1, %v1258_v28 }
  0x62   : > { %v246_v30 = vadd.s32 %v244_v24, %v242_v20  ;;  %v266_v35 = vsel %vm265_vm10, 1, %v1100_v15  ;;  %v362_v43 = vshll.u32 %v1098_v1, %v1255_v17  ;;  %v363_v44 = vshrl.u32 %v1099_v10, %v1258_v28 }
  0x63   : > { %v268_v41 = vadd.s32 %v266_v35, %v264_v25  ;;  %vm365_vm11 = vcmp.lt.s32.totalorder %v1268_v42, 1  ;;  %v1300_v46 = vadd.s32 %v263_v3, %v259_v11  ;;  %v361_v47 = vor.u32 %v360_v39, %v359_v22 }
  0x64   : > { %v247_v45 = vadd.s32 %v246_v30, %v236_v4  ;;  %vm367_vm12 = vcmp.lt.s32.totalorder %v1268_v42, 3  ;;  %v364_v49 = vor.u32 %v363_v44, %v362_v43  ;;  %vm366_vm13 = vcmp.lt.s32.totalorder %v1268_v42, 2 }
  0x65   : > { %v269_v48 = vadd.s32 %v268_v41, %v258_v9  ;;  %vm368_vm14 = vcmp.lt.s32.totalorder %v1268_v42, 4  ;;  %v373_v17 = vsel %vm365_vm11, %v1281_v14, %v1290_v27  ;;  %v382_v53 = vand.u32 65535, %v1261_v37 }
  0x66   : > { %v1305_v50 = vadd.s32 %v247_v45, %v238_v7  ;;  %v374_v52 = vsel %vm368_vm14, %v361_v47, 920167782  ;;  %v383_v58 = vshrl.u32 %v1261_v37, 16  ;;  %v500_v60 = vsel %vm499_vm6, %v1240_v55, 0 }
  0x67   : > { %v270_v54 = vadd.s32 %v269_v48, %v260_v13  ;;  %v375_v56 = vsel %vm367_vm12, %v358_v36, %v374_v52  ;;  %v271_v62 = vmul.u32 %v1238_v51, %v1264_v38  ;;  %v377_v2 = vsel %vm365_vm11, %v1290_v27, %v358_v36 }
  0x68   : > { %vm273_vm15 = vc.u32 %v1305_v50, %v1300_v46  ;;  %v376_v0 = vsel %vm366_vm13, %v373_v17, %v375_v56  ;;  %v378_v5 = vsel %vm368_vm14, %v364_v49, 1326507024  ;;  %v502_v13 = vand.u32 31, %v500_v60 }
  0x69   : > { %v274_v4 = vadd.s32 1, %v270_v54  ;;  %v406_v6 = vand.u32 65535, %v376_v0  ;;  %v407_v7 = vshrl.u32 %v376_v0, 16  ;;  %v379_v55 = vsel %vm367_vm12, %v361_v47, %v378_v5 }
  0x6a   : > { %v380_v38 = vsel %vm366_vm13, %v377_v2, %v379_v55  ;;  %v349_v16 = vshrl.u32 %v1094_v57, %v1258_v28  ;;  %v1339_v47 = vsub.s32 32, %v502_v13  ;;  %v370_v17 = vsel %vm368_vm14, %v358_v36, 2102212464 }
  0x6b   : > { %v275_v51 = vsel %vm273_vm15, %v274_v4, %v270_v54  ;;  %v409_v8 = vmul.u32 %v407_v7, %v382_v53  ;;  %v384_v11 = vand.u32 65535, %v380_v38  ;;  %v385_v12 = vshrl.u32 %v380_v38, 16 }
  0x6c   : > { %v276_v9 = vadd.s32 %v275_v51, %v271_v62  ;;  %v408_v3 = vmul.u32 %v406_v6, %v382_v53  ;;  %v410_v19 = vmul.u32 %v406_v6, %v383_v58  ;;  %v411_v44 = vmul.u32 %v407_v7, %v383_v58 }
  0x6d   : > { %v412_v20 = vshll.u32 %v409_v8, 16  ;;  %v386_v22 = vmul.u32 %v384_v11, %v382_v53  ;;  %v387_v24 = vmul.u32 %v385_v12, %v382_v53  ;;  %v388_v25 = vmul.u32 %v384_v11, %v383_v58 }
  0x6e   : > { %v277_v21 = vadd.s32 536870912, %v276_v9  ;;  %v414_v30 = vshll.u32 %v410_v19, 16  ;;  %v389_v39 = vmul.u32 %v385_v12, %v383_v58  ;;  %v369_v48 = vsel %vm365_vm11, %v349_v16, %v1281_v14 }
  0x6f   : > { %v390_v41 = vshll.u32 %v387_v24, 16  ;;  %v392_v43 = vshll.u32 %v388_v25, 16  ;;  %vm416_vm0 = vc.u32 %v408_v3, %v412_v20  ;;  %v418_v45 = vadd.s32 %v412_v20, %v408_v3 }
  0x70   : > { %v1337_v35 = vshrl.u32 %v277_v21, 30  ;;  %v417_v53 = vsel %vm416_vm0, 1, %v1100_v15  ;;  %v391_v56 = vshrl.u32 %v387_v24, 16  ;;  %v413_v0 = vshrl.u32 %v409_v8, 16 }
  0x71   : > { %vm394_vm1 = vc.u32 %v386_v22, %v390_v41  ;;  %v396_v49 = vadd.s32 %v390_v41, %v386_v22  ;;  %vm420_vm2 = vc.u32 %v418_v45, %v414_v30  ;;  %v419_v2 = vadd.s32 %v417_v53, %v411_v44 }
  0x72   : > { %v279_v28 = vshll.u32 %v1337_v35, 30  ;;  %v395_v52 = vsel %vm394_vm1, 1, %v1100_v15  ;;  %v421_v14 = vsel %vm420_vm2, 1, %v1100_v15  ;;  %v371_v36 = vsel %vm367_vm12, %v1290_v27, %v370_v17 }
  0x73   : > { %v397_v58 = vadd.s32 %v395_v52, %v389_v39  ;;  %vm398_vm3 = vc.u32 %v396_v49, %v392_v43  ;;  %v393_v5 = vshrl.u32 %v388_v25, 16  ;;  %v415_v7 = vshrl.u32 %v410_v19, 16 }
  0x74   : > { %v1349_v54 = vsub.s32 %v276_v9, %v279_v28  ;;  %v399_v62 = vsel %vm398_vm3, 1, %v1100_v15  ;;  %v423_v55 = vadd.s32 %v421_v14, %v419_v2  ;;  %v1358_v38 = vadd.s32 %v418_v45, %v414_v30 }
  0x75   : > { %v401_v6 = vadd.s32 %v399_v62, %v397_v58  ;;  %v488_v8 = vand.u32 2147483647, %v1224_v32  ;;  %v372_v9 = vsel %vm366_vm13, %v369_v48, %v371_v36  ;;  %v1363_v12 = vshrl.u32 %v500_v60, 5 }
  0x76   : > { %v282_v4 = vsub.s32 0, %v1349_v54  ;;  %vm281_vm4 = vcmp.lt.s32.totalorder %v1349_v54, 0  ;;  %v424_v11 = vadd.s32 %v423_v55, %v413_v0  ;;  %v505_v16 = vshll.u32 %v1094_v57, %v502_v13 }
  0x77   : > { %v402_v51 = vadd.s32 %v401_v6, %v391_v56  ;;  %v506_v19 = vshrl.u32 %v1095_v59, %v1339_v47  ;;  %v508_v20 = vshll.u32 %v1095_v59, %v502_v13  ;;  %v509_v22 = vshrl.u32 %v1096_v61, %v1339_v47 }
  0x78   : > { %v283_v27 = vsel %vm281_vm4, %v282_v4, %v1349_v54  ;;  %v425_v21 = vadd.s32 %v424_v11, %v415_v7  ;;  %v514_v42 = vshll.u32 %v1097_v63, %v502_v13  ;;  %v515_v60 = vshrl.u32 %v1098_v1, %v1339_v47 }
  0x79   : > { %v1367_v3 = vadd.s32 %v402_v51, %v393_v5  ;;  %v426_v24 = vmul.u32 %v1261_v37, %v372_v9  ;;  %v511_v25 = vshll.u32 %v1096_v61, %v502_v13  ;;  %v512_v30 = vshrl.u32 %v1097_v63, %v1339_v47 }
  0x7a   : > { %v284_v39 = vclz %v283_v27  ;;  %v429_v41 = vadd.s32 1, %v425_v21  ;;  %v517_v43 = vshll.u32 %v1098_v1, %v502_v13  ;;  %v518_v44 = vshrl.u32 %v1099_v10, %v1339_v47 }
  0x7b   : > { %vm428_vm5 = vc.u32 %v1367_v3, %v1358_v38  ;;  %v495_v45 = vand.u32 8388607, %v488_v8  ;;  %v1388_v37 = vor.u32 %v506_v19, %v505_v16  ;;  %v1390_v48 = vor.u32 %v509_v22, %v508_v20 }
  0x7c   : > { %v430_v28 = vsel %vm428_vm5, %v429_v41, %v425_v21  ;;  %v516_v49 = vor.u32 %v515_v60, %v514_v42  ;;  %v1392_v52 = vor.u32 %v512_v30, %v511_v25  ;;  %vm520_vm6 = vcmp.lt.s32.totalorder %v1363_v12, 1 }
  0x7d   : > { %v431_v17 = vadd.s32 %v430_v28, %v426_v24  ;;  %vm523_vm7 = vcmp.lt.s32.totalorder %v1363_v12, 4  ;;  %v912_v13 = vadd.s32 4294967294, %v284_v39  ;;  %v519_v53 = vor.u32 %v518_v44, %v517_v43 }
  0x7e   : > { %vm522_vm8 = vcmp.lt.s32.totalorder %v1363_v12, 3  ;;  %v496_v58 = vor.u32 8388608, %v495_v45  ;;  %vm521_vm9 = vcmp.lt.s32.totalorder %v1363_v12, 2  ;;  %v528_v62 = vsel %vm520_vm6, %v1388_v37, %v1390_v48 }
  0x7f   : > { %v432_v56 = vadd.s32 536870912, %v431_v17  ;;  %v529_v0 = vsel %vm523_vm7, %v516_v49, 920167782  ;;  %v532_v4 = vsel %vm520_vm6, %v1390_v48, %v1392_v52  ;;  %vm913_vm10 = vcmp.lt.s32.totalorder %v912_v13, 0 }
  0x80   : > { %v530_v14 = vsel %vm522_vm8, %v1392_v52, %v529_v0  ;;  %v533_v36 = vsel %vm523_vm7, %v519_v53, 1326507024  ;;  %v1420_v55 = vshll.u32 %v496_v58, 8  ;;  %v287_v9 = vsel %vm913_vm10, 0, %v912_v13 }
  0x81   : > { %v1404_v2 = vshrl.u32 %v432_v56, 30  ;;  %v531_v6 = vsel %vm521_vm9, %v528_v62, %v530_v14  ;;  %v534_v7 = vsel %vm522_vm8, %v516_v49, %v533_v36  ;;  %v292_v42 = vsub.s32 4294967266, %v287_v9 }
  0x82   : > { %v535_v51 = vsel %vm521_vm9, %v532_v4, %v534_v7  ;;  %v537_v16 = vand.u32 65535, %v1420_v55  ;;  %v538_v27 = vshrl.u32 %v1420_v55, 16  ;;  %v562_v21 = vshrl.u32 %v531_v6, 16 }
  0x83   : > { %v434_v5 = vshll.u32 %v1404_v2, 30  ;;  %v539_v19 = vand.u32 65535, %v535_v51  ;;  %v540_v20 = vshrl.u32 %v535_v51, 16  ;;  %v561_v43 = vand.u32 65535, %v531_v6 }
  0x84   : > { %v564_v44 = vmul.u32 %v562_v21, %v537_v16  ;;  %v272_v45 = vadd.s32 %v1300_v46, %v1305_v50  ;;  %v288_v28 = vsub.s32 32, %v287_v9  ;;  %v293_v13 = vadd.s32 127, %v292_v42 }
  0x85   : > { %v1424_v11 = vsub.s32 %v431_v17, %v434_v5  ;;  %v541_v60 = vmul.u32 %v539_v19, %v537_v16  ;;  %v542_v24 = vmul.u32 %v540_v20, %v537_v16  ;;  %v543_v25 = vmul.u32 %v539_v19, %v538_v27 }
  0x86   : > { %v544_v49 = vmul.u32 %v540_v20, %v538_v27  ;;  %v563_v62 = vmul.u32 %v561_v43, %v537_v16  ;;  %v567_v0 = vshll.u32 %v564_v44, 16  ;;  %v565_v36 = vmul.u32 %v561_v43, %v538_v27 }
  0x87   : > { %vm436_vm11 = vcmp.lt.s32.totalorder %v1424_v11, 0  ;;  %v437_v22 = vsub.s32 0, %v1424_v11  ;;  %v545_v41 = vshll.u32 %v542_v24, 16  ;;  %v547_v17 = vshll.u32 %v543_v25, 16 }
  0x88   : > { %v289_v5 = vshll.u32 %v1349_v54, %v287_v9  ;;  %v290_v6 = vshrl.u32 %v272_v45, %v288_v28  ;;  %v294_v46 = vshll.u32 %v293_v13, 23  ;;  %v173_v50 = vmul.f32 %v1219_v29, %v169_v23 }
  0x89   : > { %v438_v30 = vsel %vm436_vm11, %v437_v22, %v1424_v11  ;;  %vm549_vm12 = vc.u32 %v541_v60, %v545_v41  ;;  %v551_v56 = vadd.s32 %v545_v41, %v541_v60  ;;  %v546_v19 = vshrl.u32 %v542_v24, 16 }
  0x8a   : > { %v439_v39 = vclz %v438_v30  ;;  %v550_v58 = vsel %vm549_vm12, 1, %v1100_v15  ;;  %vm571_vm15 = vc.u32 %v563_v62, %v567_v0  ;;  %v504_v16 = vshrl.u32 %v1094_v57, %v1339_v47 }
  0x8b   : > { %v552_v4 = vadd.s32 %v550_v58, %v544_v49  ;;  %vm553_vm14 = vc.u32 %v551_v56, %v547_v17  ;;  %v566_v22 = vmul.u32 %v562_v21, %v538_v27  ;;  %v569_v42 = vshll.u32 %v565_v36, 16 }
  0x8c   : > { %v915_v53 = vadd.s32 4294967294, %v439_v39  ;;  %v554_v7 = vsel %vm553_vm14, 1, %v1100_v15  ;;  %v291_v60 = vor.u32 %v290_v6, %v289_v5  ;;  %v295_v30 = vor.u32 4788187, %v294_v46 }
  0x8d   : > { %v556_v20 = vadd.s32 %v554_v7, %v552_v4  ;;  %v427_v54 = vadd.s32 %v1358_v38, %v1367_v3  ;;  %v525_v18 = vsel %vm523_vm7, %v1392_v52, 2102212464  ;;  %v572_v23 = vsel %vm571_vm15, 1, %v1100_v15 }
  0x8e   : > { %vm916_vm13 = vcmp.lt.s32.totalorder %v915_v53, 0  ;;  %v573_v29 = vadd.s32 %v567_v0, %v563_v62  ;;  %v1448_v24 = vadd.f32 %v173_v50, %v1215_v26  ;;  %v548_v47 = vshrl.u32 %v543_v25, 16 }
  0x8f   : > { %v442_v14 = vsel %vm916_vm13, 0, %v915_v53  ;;  %v557_v27 = vadd.s32 %v556_v20, %v546_v19  ;;  %v524_v21 = vsel %vm520_vm6, %v504_v16, %v1388_v37  ;;  %v568_v41 = vshrl.u32 %v564_v44, 16 }
  0x90   : > { %v447_v51 = vsub.s32 4294967266, %v442_v14  ;;  %v443_v9 = vsub.s32 32, %v442_v14  ;;  %v574_v38 = vadd.s32 %v572_v23, %v566_v22  ;;  %vm575_vm0 = vc.u32 %v573_v29, %v569_v42 }
  0x91   : > { %v296_v3 = vand.u32 2147483647, %v295_v30  ;;  %v298_v43 = vcvt.s32.f32 %v291_v60  ;;  %v526_v52 = vsel %vm522_vm8, %v1390_v48, %v525_v18  ;;  %v576_v45 = vsel %vm575_vm0, 1, %v1100_v15 }
  0x92   : > { %v448_v39 = vadd.s32 127, %v447_v51  ;;  %v444_v26 = vshll.u32 %v1424_v11, %v442_v14  ;;  %v445_v28 = vshrl.u32 %v427_v54, %v443_v9  ;;  %v570_v25 = vshrl.u32 %v565_v36, 16 }
  0x93   : > { %v578_v49 = vadd.s32 %v576_v45, %v574_v38  ;;  %v1458_v13 = vadd.s32 %v557_v27, %v548_v47  ;;  %v1460_v37 = vadd.s32 %v573_v29, %v569_v42  ;;  %v646_v44 = vand.u32 2139095040, %v1448_v24 }
  0x94   : > { %v449_v17 = vshll.u32 %v448_v39, 23  ;;  %v527_v53 = vsel %vm521_vm9, %v524_v21, %v526_v52  ;;  %v299_v48 = vmul.f32 %v298_v43, %v296_v3  ;;  %v446_v62 = vor.u32 %v445_v28, %v444_v26 }
  0x95   : > { %v579_v56 = vadd.s32 %v578_v49, %v568_v41  ;;  %v647_v58 = vshrl.u32 %v646_v44, 23  ;;  %v581_v11 = vmul.u32 %v1420_v55, %v527_v53  ;;  %vm583_vm1 = vc.u32 %v1458_v13, %v1460_v37 }
  0x96   : > { %v450_v4 = vor.u32 4788187, %v449_v17  ;;  %v300_v6 = vxor.u32 2147483648, %v299_v48  ;;  %v453_v7 = vcvt.s32.f32 %v446_v62  ;;  %vm180_vm3 = vcmp.lt.s32.totalorder %v1222_v31, 0 }
  0x97   : > { %v580_v0 = vadd.s32 %v579_v56, %v570_v25  ;;  %v920_v14 = vadd.s32 4294967169, %v647_v58  ;;  %vm1471_vm4 = vcmp.le.f32.partialorder %v178_v34, 0.7853982  ;;  %v643_v60 = vand.u32 2147483647, %v1448_v24 }
  0x98   : > { %v451_v50 = vand.u32 2147483647, %v450_v4  ;;  %v301_v16 = vsel %vm180_vm3, %v300_v6, %v299_v48  ;;  %v302_v9 = vsub.s32 4, %v1337_v35  ;;  %vm335_vm5 = vcmp.lt.s32.totalorder %v1227_v33, 0 }
  0x99   : > { %v584_v36 = vadd.s32 1, %v580_v0  ;;  %v653_v5 = vadd.s32 1, %v920_v14  ;;  %v1487_v34 = vsel %vm1471_vm4, %v1222_v31, %v301_v16  ;;  %v650_v29 = vand.u32 8388607, %v643_v60 }
  0x9a   : > { %v454_v22 = vmul.f32 %v453_v7, %v451_v50  ;;  %v1511_v28 = vmul.f32 %v1487_v34, %v1487_v34  ;;  %v1516_v17 = vsel %vm180_vm3, %v302_v9, %v1337_v35  ;;  %vm1520_vm7 = vcmp.le.f32.partialorder %v333_v40, 0.7853982 }
  0x9b   : > { %v585_v46 = vsel %vm583_vm1, %v584_v36, %v580_v0  ;;  %vm654_vm2 = vcmp.gt.s32.totalorder %v653_v5, 0  ;;  %v651_v49 = vor.u32 8388608, %v650_v29  ;;  %v582_v62 = vadd.s32 %v1460_v37, %v1458_v13 }
  0x9c   : > { %v586_v12 = vadd.s32 %v585_v46, %v581_v11  ;;  %v655_v51 = vsel %vm654_vm2, %v653_v5, 0  ;;  %v455_v18 = vxor.u32 2147483648, %v454_v22  ;;  %v307_v40 = vmul.f32 -0.001358992, %v1511_v28 }
  0x9d   : > { %v657_v20 = vand.u32 31, %v655_v51  ;;  %v1492_v39 = vshrl.u32 %v655_v51, 5  ;;  %v314_v35 = vmul.f32 -0.00019511016, %v1511_v28  ;;  %v1538_v0 = vshll.u32 %v651_v49, 8 }
  0x9e   : > { %v587_v19 = vadd.s32 536870912, %v586_v12  ;;  %v1559_v50 = vadd.f32 0.041655596, %v307_v40  ;;  %vm490_vm13 = vcmp.lt.s32.totalorder %v1224_v32, 0  ;;  %vm1580_vm14 = vcmp.le.f32.partialorder %v488_v8, 0.7853982 }
  0x9f   : > { %v1480_v30 = vsub.s32 32, %v657_v20  ;;  %v660_v47 = vshll.u32 %v1094_v57, %v657_v20  ;;  %v663_v21 = vshll.u32 %v1095_v59, %v657_v20  ;;  %v669_v41 = vshll.u32 %v1097_v63, %v657_v20 }
  0xa0   : > { %v1477_v42 = vshrl.u32 %v587_v19, 30  ;;  %v666_v52 = vshll.u32 %v1096_v61, %v657_v20  ;;  %v672_v26 = vshll.u32 %v1098_v1, %v657_v20  ;;  %vm675_vm8 = vcmp.lt.s32.totalorder %v1492_v39, 1 }
  0xa1   : > { %v661_v27 = vshrl.u32 %v1095_v59, %v1480_v30  ;;  %v664_v3 = vshrl.u32 %v1096_v61, %v1480_v30  ;;  %v670_v43 = vshrl.u32 %v1098_v1, %v1480_v30  ;;  %v667_v45 = vshrl.u32 %v1097_v63, %v1480_v30 }
  0xa2   : > { %v589_v54 = vshll.u32 %v1477_v42, 30  ;;  %v673_v59 = vshrl.u32 %v1099_v10, %v1480_v30  ;;  %v456_v63 = vsel %vm335_vm5, %v455_v18, %v454_v22  ;;  %vm678_vm9 = vcmp.lt.s32.totalorder %v1492_v39, 4 }
  0xa3   : > { %v1526_v10 = vor.u32 %v661_v27, %v660_v47  ;;  %v1528_v44 = vor.u32 %v664_v3, %v663_v21  ;;  %v671_v53 = vor.u32 %v670_v43, %v669_v41  ;;  %v1530_v48 = vor.u32 %v667_v45, %v666_v52 }
  0xa4   : > { %v590_v23 = vsub.s32 %v586_v12, %v589_v54  ;;  %v674_v56 = vor.u32 %v673_v59, %v672_v26  ;;  %v1543_v4 = vsel %vm1520_vm7, %v1227_v33, %v456_v63  ;;  %vm676_vm11 = vcmp.lt.s32.totalorder %v1492_v39, 2 }
  0xa5   : > { %vm677_vm12 = vcmp.lt.s32.totalorder %v1492_v39, 3  ;;  %v683_v14 = vsel %vm675_vm8, %v1526_v10, %v1528_v44  ;;  %v684_v13 = vsel %vm678_vm9, %v671_v53, 920167782  ;;  %v687_v46 = vsel %vm675_vm8, %v1528_v44, %v1530_v48 }
  0xa6   : > { %vm591_vm6 = vcmp.lt.s32.totalorder %v590_v23, 0  ;;  %v592_v38 = vsub.s32 0, %v590_v23  ;;  %v688_v37 = vsel %vm678_vm9, %v674_v56, 1326507024  ;;  %v315_v7 = vadd.f32 0.008332121, %v314_v35 }
  0xa7   : > { %v1563_v12 = vmul.f32 %v1543_v4, %v1543_v4  ;;  %v692_v51 = vand.u32 65535, %v1538_v0  ;;  %v685_v16 = vsel %vm677_vm12, %v1530_v48, %v684_v13  ;;  %v689_v22 = vsel %vm677_vm12, %v671_v53, %v688_v37 }
  0xa8   : > { %v593_v25 = vsel %vm591_vm6, %v592_v38, %v590_v23  ;;  %v686_v9 = vsel %vm676_vm11, %v683_v14, %v685_v16  ;;  %v690_v18 = vsel %vm676_vm11, %v687_v46, %v689_v22  ;;  %v316_v38 = vmul.f32 %v315_v7, %v1511_v28 }
  0xa9   : > { %v594_v1 = vclz %v593_v25  ;;  %v462_v54 = vmul.f32 -0.001358992, %v1563_v12  ;;  %v694_v21 = vand.u32 65535, %v690_v18  ;;  %v695_v41 = vshrl.u32 %v690_v18, 16 }
  0xaa   : > { %v469_v3 = vmul.f32 -0.00019511016, %v1563_v12  ;;  %v716_v43 = vand.u32 65535, %v686_v9  ;;  %v717_v52 = vshrl.u32 %v686_v9, 16  ;;  %v659_v37 = vshrl.u32 %v1094_v57, %v1480_v30 }
  0xab   : > { %v918_v58 = vadd.s32 4294967294, %v594_v1  ;;  %v696_v59 = vmul.u32 %v694_v21, %v692_v51  ;;  %v697_v25 = vmul.u32 %v695_v41, %v692_v51  ;;  %v463_v49 = vadd.f32 0.041655596, %v462_v54 }
  0xac   : > { %v718_v8 = vmul.u32 %v716_v43, %v692_v51  ;;  %v719_v1 = vmul.u32 %v717_v52, %v692_v51  ;;  %v470_v35 = vadd.f32 0.008332121, %v469_v3 }
  0xad   : > { %vm919_vm10 = vcmp.lt.s32.totalorder %v918_v58, 0 }
  0xae   : > { %v597_v11 = vsel %vm919_vm10, 0, %v918_v58  ;;  %v700_v58 = vshll.u32 %v697_v25, 16  ;;  %v722_v14 = vshll.u32 %v719_v1, 16  ;;  %v471_v30 = vmul.f32 %v470_v35, %v1563_v12 }
  0xaf   : > { %v598_v36 = vsub.s32 32, %v597_v11  ;;  %v599_v5 = vshll.u32 %v590_v23, %v597_v11  ;;  %v602_v6 = vsub.s32 4294967266, %v597_v11  ;;  %v693_v23 = vshrl.u32 %v1538_v0, 16 }
  0xb0   : > { %vm704_vm15 = vc.u32 %v696_v59, %v700_v58  ;;  %vm726_vm0 = vc.u32 %v718_v8, %v722_v14  ;;  %v728_v22 = vadd.s32 %v722_v14, %v718_v8  ;;  %v317_v8 = vadd.f32 -0.16666654, %v316_v38 }
  0xb1   : > { %v600_v19 = vshrl.u32 %v582_v62, %v598_v36  ;;  %v603_v20 = vadd.s32 127, %v602_v6  ;;  %v698_v63 = vmul.u32 %v694_v21, %v693_v23  ;;  %v699_v56 = vmul.u32 %v695_v41, %v693_v23 }
  0xb2   : > { %v720_v40 = vmul.u32 %v716_v43, %v693_v23  ;;  %v721_v11 = vmul.u32 %v717_v52, %v693_v23  ;;  %v706_v36 = vadd.s32 %v700_v58, %v696_v59  ;;  %v705_v6 = vsel %vm704_vm15, 1, %v1100_v15 }
  0xb3   : > { %v601_v47 = vor.u32 %v600_v19, %v599_v5  ;;  %v604_v27 = vshll.u32 %v603_v20, 23  ;;  %v702_v62 = vshll.u32 %v698_v63, 16  ;;  %v701_v5 = vshrl.u32 %v697_v25, 16 }
  0xb4   : > { %v724_v46 = vshll.u32 %v720_v40, 16  ;;  %v707_v51 = vadd.s32 %v705_v6, %v699_v56  ;;  %v727_v19 = vsel %vm726_vm0, 1, %v1100_v15  ;;  %v680_v20 = vsel %vm678_vm9, %v1530_v48, 2102212464 }
  0xb5   : > { %v605_v45 = vor.u32 4788187, %v604_v27  ;;  %v608_v26 = vcvt.s32.f32 %v601_v47  ;;  %vm708_vm1 = vc.u32 %v706_v36, %v702_v62  ;;  %v729_v57 = vadd.s32 %v727_v19, %v721_v11 }
  0xb6   : > { %v709_v16 = vsel %vm708_vm1, 1, %v1100_v15  ;;  %v703_v9 = vshrl.u32 %v698_v63, 16  ;;  %v679_v48 = vsel %vm675_vm8, %v659_v37, %v1526_v10  ;;  %v723_v47 = vshrl.u32 %v719_v1, 16 }
  0xb7   : > { %v606_v53 = vand.u32 2147483647, %v605_v45  ;;  %v711_v18 = vadd.s32 %v709_v16, %v707_v51  ;;  %vm730_vm2 = vc.u32 %v728_v22, %v724_v46  ;;  %v681_v21 = vsel %vm677_vm12, %v1528_v44, %v680_v20 }
  0xb8   : > { %v731_v3 = vsel %vm730_vm2, 1, %v1100_v15  ;;  %v309_v43 = vmul.f32 %v1559_v50, %v1511_v28  ;;  %v457_v52 = vsub.s32 4, %v1404_v2  ;;  %v725_v45 = vshrl.u32 %v720_v40, 16 }
  0xb9   : > { %v609_v13 = vmul.f32 %v608_v26, %v606_v53  ;;  %v712_v41 = vadd.s32 %v711_v18, %v701_v5  ;;  %v733_v26 = vadd.s32 %v731_v3, %v729_v57  ;;  %v1616_v63 = vadd.s32 %v728_v22, %v724_v46 }
  0xba   : > { %v612_v1 = vsub.s32 4, %v1477_v42  ;;  %v682_v44 = vsel %vm676_vm11, %v679_v48, %v681_v21  ;;  %v464_v53 = vmul.f32 %v463_v49, %v1563_v12  ;;  %v472_v50 = vadd.f32 -0.16666654, %v471_v30 }
  0xbb   : > { %v610_v7 = vxor.u32 2147483648, %v609_v13  ;;  %v1614_v25 = vadd.s32 %v712_v41, %v703_v9  ;;  %v734_v15 = vadd.s32 %v733_v26, %v723_v47  ;;  %v305_v40 = vsel %vm1471_vm4, 0, %v1516_v17 }
  0xbc   : > { %v736_v38 = vmul.u32 %v1538_v0, %v682_v44  ;;  %v310_v39 = vadd.f32 -0.4999988, %v309_v43  ;;  %v318_v14 = vmul.f32 %v317_v8, %v1511_v28  ;;  %v458_v49 = vsel %vm335_vm5, %v457_v52, %v1404_v2 }
  0xbd   : > { %v611_v54 = vsel %vm490_vm13, %v610_v7, %v609_v13  ;;  %v735_v35 = vadd.s32 %v734_v15, %v725_v45  ;;  %vm738_vm3 = vc.u32 %v1614_v25, %v1616_v63  ;;  %v465_v37 = vadd.f32 -0.4999988, %v464_v53 }
  0xbe   : > { %v1600_v23 = vsel %vm1580_vm14, %v1224_v32, %v611_v54  ;;  %v473_v55 = vmul.f32 %v472_v50, %v1563_v12  ;;  %v613_v17 = vsel %vm490_vm13, %v612_v1, %v1477_v42  ;;  %v460_v6 = vsel %vm1520_vm7, 0, %v458_v49 }
  0xbf   : > { %v616_v27 = vmul.f32 %v1600_v23, %v1600_v23  ;;  %v739_v13 = vadd.s32 1, %v735_v35  ;;  %v311_v51 = vmul.f32 %v310_v39, %v1511_v28  ;;  %v319_v19 = vadd.f32 1.0, %v318_v14 }
  0xc0   : > { %v322_v2 = vadd.s32 3, %v305_v40  ;;  %v615_v20 = vsel %vm1580_vm14, 0, %v613_v17  ;;  %v466_v16 = vmul.f32 %v465_v37, %v1563_v12  ;;  %v474_v22 = vadd.f32 1.0, %v473_v55 }
  0xc1   : > { %v617_v10 = vmul.f32 -0.001358992, %v616_v27  ;;  %v624_v59 = vmul.f32 -0.00019511016, %v616_v27  ;;  %v740_v5 = vsel %vm738_vm3, %v739_v13, %v735_v35  ;;  %v477_v42 = vadd.s32 3, %v460_v6 }
  0xc2   : > { %v741_v7 = vadd.s32 %v740_v5, %v736_v38  ;;  %v632_v9 = vadd.s32 3, %v615_v20  ;;  %v312_v61 = vadd.f32 1.0, %v311_v51  ;;  %v320_v48 = vmul.f32 %v319_v19, %v1487_v34 }
  0xc3   : > { %v618_v56 = vadd.f32 0.041655596, %v617_v10  ;;  %v625_v58 = vadd.f32 0.008332121, %v624_v59  ;;  %v323_v47 = vand.u32 3, %v322_v2  ;;  %v467_v28 = vadd.f32 1.0, %v466_v16 }
  0xc4   : > { %v742_v57 = vadd.s32 536870912, %v741_v7  ;;  %v475_v21 = vmul.f32 %v474_v22, %v1543_v4  ;;  %v478_v41 = vand.u32 3, %v477_v42  ;;  %v633_v43 = vand.u32 3, %v632_v9 }
  0xc5   : > { %v619_v62 = vmul.f32 %v618_v56, %v616_v27  ;;  %v626_v11 = vmul.f32 %v625_v58, %v616_v27  ;;  %vm325_vm4 = vcmp.eq.s32.totalorder %v323_v47, 0  ;;  %vm328_vm5 = vcmp.eq.s32.totalorder %v323_v47, 2 }
  0xc6   : > { %v1642_v18 = vshrl.u32 %v742_v57, 30  ;;  %v329_v45 = vxor.u32 2147483648, %v312_v61  ;;  %v481_v26 = vxor.u32 2147483648, %v475_v21  ;;  %v484_v10 = vxor.u32 2147483648, %v467_v28 }
  0xc7   : > { %v627_v36 = vadd.f32 -0.16666654, %v626_v11  ;;  %v620_v0 = vadd.f32 -0.4999988, %v619_v62  ;;  %vm480_vm7 = vcmp.eq.s32.totalorder %v478_v41, 0  ;;  %vm483_vm8 = vcmp.eq.s32.totalorder %v478_v41, 2 }
  0xc8   : > { %v744_v29 = vshll.u32 %v1642_v18, 30  ;;  %vm635_vm9 = vcmp.eq.s32.totalorder %v633_v43, 0  ;;  %vm638_vm10 = vcmp.eq.s32.totalorder %v633_v43, 2  ;;  %vm324_vm11 = vcmp.lt.s32.totalorder %v323_v47, 2 }
  0xc9   : > { %v628_v46 = vmul.f32 %v627_v36, %v616_v27  ;;  %v621_v30 = vmul.f32 %v620_v0, %v616_v27  ;;  %v326_v27 = vxor.u32 2147483648, %v320_v48  ;;  %vm479_vm12 = vcmp.lt.s32.totalorder %v478_v41, 2  ;;  %v799_v36 = vld [vmem:[%s1205_s24 + $0x8] sm:$0xff]  ;;  %v800_v0 = vld [vmem:[%s1205_s24 + $0x10] sm:$0xff] }
  0xca   : > { %v745_v52 = vsub.s32 %v741_v7, %v744_v29  ;;  %v330_v44 = vsel %vm328_vm5, %v329_v45, %v320_v48  ;;  %v482_v15 = vsel %vm480_vm7, %v467_v28, %v481_v26  ;;  %v485_v53 = vsel %vm483_vm8, %v484_v10, %v475_v21 }
  0xcb   : > { %v629_v54 = vadd.f32 1.0, %v628_v46  ;;  %v622_v3 = vadd.f32 1.0, %v621_v30  ;;  %v327_v1 = vsel %vm325_vm4, %v312_v61, %v326_v27  ;;  %vm634_vm13 = vcmp.lt.s32.totalorder %v633_v43, 2 }
  0xcc   : > { %vm746_vm6 = vcmp.lt.s32.totalorder %v745_v52, 0  ;;  %v747_v34 = vsub.s32 0, %v745_v52  ;;  %vm321_vm14 = vweird.f32 %v1222_v31  ;;  %v331_v40 = vsel %vm324_vm11, %v327_v1, %v330_v44 }
  0xcd   : > { %v630_v12 = vmul.f32 %v629_v54, %v1600_v23  ;;  %v639_v4 = vxor.u32 2147483648, %v622_v3  ;;  %vm476_vm15 = vweird.f32 %v1227_v33  ;;  %v737_v35 = vadd.s32 %v1616_v63, %v1614_v25  ;;  %v798_v63 = vld [vmem:[%s1205_s24] sm:$0xff] }
  0xce   : > { %v748_v8 = vsel %vm746_vm6, %v747_v34, %v745_v52  ;;  %v486_v62 = vsel %vm479_vm12, %v482_v15, %v485_v53  ;;  %vm631_vm1 = vweird.f32 %v1224_v32  ;;  %v332_v31 = vsel %vm321_vm14, nan, %v331_v40  ;;  %v801_v34 = vld [vmem:[%s1205_s24 + $0x18] sm:$0xff] }
  0xcf   : > { %v636_v59 = vxor.u32 2147483648, %v630_v12  ;;  %v749_v23 = vclz %v748_v8  ;;  %v640_v56 = vsel %vm638_vm10, %v639_v4, %v630_v12  ;;  %v487_v13 = vsel %vm476_vm15, nan, %v486_v62 }
  0xd0   : > { %v802_v5 = vadd.f32 %v798_v63, %v332_v31  ;;  %v803_v6 = vadd.f32 %v799_v36, %v487_v13  ;;  %vm645_vm2 = vcmp.lt.s32.totalorder %v1448_v24, 0  ;;  %v767_v2 = vsub.s32 4, %v1642_v18 }
  0xd1   : > { %v637_v50 = vsel %vm635_vm9, %v622_v3, %v636_v59  ;;  %v921_v58 = vadd.s32 4294967294, %v749_v23  ;;  %vm644_vm3 = vcmp.le.f32.partialorder %v643_v60, 0.7853982  ;;  %vm786_vm7 = vweird.f32 %v1448_v24 }
  0xd2   : > { %v641_v11 = vsel %vm634_vm13, %v637_v50, %v640_v56  ;;  %806 = vst [vmem:[%s1660_s17] sm:$0xff] %v802_v5  ;;  %v768_v22 = vsel %vm645_vm2, %v767_v2, %v1642_v18 }
  0xd3   : > { %vm922_vm0 = vcmp.lt.s32.totalorder %v921_v58, 0  ;;  %v642_v37 = vsel %vm631_vm1, nan, %v641_v11  ;;  %807 = vst [vmem:[%s1660_s17 + $0x8] sm:$0xff] %v803_v6  ;;  %v770_v30 = vsel %vm644_vm3, 0, %v768_v22 }
  0xd4   : > { %v752_v38 = vsel %vm922_vm0, 0, %v921_v58  ;;  %v804_v46 = vadd.f32 %v800_v0, %v642_v37  ;;  %v787_v47 = vadd.s32 3, %v770_v30 }
  0xd5   : > { %v753_v39 = vsub.s32 32, %v752_v38  ;;  %v754_v14 = vshll.u32 %v745_v52, %v752_v38  ;;  %v757_v49 = vsub.s32 4294967266, %v752_v38 }
  0xd6   : > { %808 = vst [vmem:[%s1660_s17 + $0x10] sm:$0xff] %v804_v46  ;;  %v788_v60 = vand.u32 3, %v787_v47 }
  0xd7   : > { %v755_v33 = vshrl.u32 %v737_v35, %v753_v39  ;;  %v758_v55 = vadd.s32 127, %v757_v49 }
  0xd8   : > { %vm793_vm4 = vcmp.eq.s32.totalorder %v788_v60, 2  ;;  %vm790_vm5 = vcmp.eq.s32.totalorder %v788_v60, 0  ;;  %vm789_vm6 = vcmp.lt.s32.totalorder %v788_v60, 2 }
  0xd9   : > { %v756_v17 = vor.u32 %v755_v33, %v754_v14  ;;  %v759_v25 = vshll.u32 %v758_v55, 23 }
  0xdb   : > { %v760_v32 = vor.u32 4788187, %v759_v25  ;;  %v763_v7 = vcvt.s32.f32 %v756_v17 }
  0xdd   : > { %v761_v51 = vand.u32 2147483647, %v760_v32 }
  0xdf   : > { %v764_v19 = vmul.f32 %v763_v7, %v761_v51 }
  0xe1   : > { %v765_v20 = vxor.u32 2147483648, %v764_v19 }
  0xe3   : > { %v766_v16 = vsel %vm645_vm2, %v765_v20, %v764_v19 }
  0xe4   : > { %v769_v57 = vsel %vm644_vm3, %v1448_v24, %v766_v16 }
  0xe5   : > { %v771_v42 = vmul.f32 %v769_v57, %v769_v57 }
  0xe7   : > { %v772_v54 = vmul.f32 -0.001358992, %v771_v42  ;;  %v779_v9 = vmul.f32 -0.00019511016, %v771_v42 }
  0xe9   : > { %v773_v61 = vadd.f32 0.041655596, %v772_v54  ;;  %v780_v48 = vadd.f32 0.008332121, %v779_v9 }
  0xeb   : > { %v774_v28 = vmul.f32 %v773_v61, %v771_v42  ;;  %v781_v21 = vmul.f32 %v780_v48, %v771_v42 }
  0xed   : > { %v775_v29 = vadd.f32 -0.4999988, %v774_v28  ;;  %v782_v41 = vadd.f32 -0.16666654, %v781_v21 }
  0xef   : > { %v776_v3 = vmul.f32 %v775_v29, %v771_v42  ;;  %v783_v12 = vmul.f32 %v782_v41, %v771_v42 }
  0xf1   : > { %v777_v18 = vadd.f32 1.0, %v776_v3  ;;  %v784_v43 = vadd.f32 1.0, %v783_v12 }
  0xf3   : > { %v785_v52 = vmul.f32 %v784_v43, %v769_v57  ;;  %v794_v27 = vxor.u32 2147483648, %v777_v18 }
  0xf5   : > { %v791_v45 = vxor.u32 2147483648, %v785_v52  ;;  %v795_v26 = vsel %vm793_vm4, %v794_v27, %v785_v52 }
  0xf7   : > { %v792_v10 = vsel %vm790_vm5, %v777_v18, %v791_v45 }
  0xf8   : > { %v796_v59 = vsel %vm789_vm6, %v792_v10, %v795_v26 }
  0xf9   : > { %v797_v4 = vsel %vm786_vm7, nan, %v796_v59 }
  0xfa   : > { %v805_v8 = vadd.f32 %v801_v34, %v797_v4 }
  0xfc   : > { %809 = vst [vmem:[%s1660_s17 + $0x18] sm:$0xff] %v805_v8 }
  0xfd   : > { %1051 = shalt.err (!%p1048_p4)
}
  0xfe   : > { %s1101_s20 = smov 256   ;;  %s1102_s21 = smov 16  }
  0xff   : > { %935 = dma.vmem_to_hbm [thread:$0]  (%p1163_p11), %s825_s30, 512, %s827_s10, %s811_s2, %s1101_s20, %s1101_s20, %s1102_s21  }
 0x100 PF: > { %s841_s22 = sand.u32 1, %s1078_s6   ;;  %p1721_p7 = scmp.ge.s32.totalorder %s1090_s9, 2 }
 0x101   : > { %s842_s23 = scalar_lea.sflag [#allocation4], %s841_s22 }
 0x102   : > { %p942_p5 = pnand %p1721_p7, %p1167_p12 }
 0x104   : > { %p943_p8 = pneg %p942_p5 }
 0x106   : > { %1073 = dma.done.wait (%p943_p8), %s842_s23, 512  }
 0x107   : > { %1075 = vsyncadd (%p943_p8), %s842_s23, 4294966784  ;;  %p14_p10 = scmp.ge.s32.totalorder %s1138_s12, 4   ;;  %s1722_s6 = smov %s1082_s7 }
 0x108   : > { %s1723_s7 = smov %s1086_s8  ;;  %s1724_s8 = smov %s1150_s15 }
 0x109   : > { %s1725_s9 = smov %s1138_s12  ;;  %16 = sbr.rel (!%p14_p10) target bundleno = 5 (0x5), region = 69 }
 0x10e   :  { %848 = vsyncpa [#allocation3], 1 }
 0x10f   :  { %850 = vsyncpa [#allocation3 + $0x1], 1 }
 0x110   :  { %851 = vsyncpa [#allocation4], 1 }
 0x111   :  { %853 = vsyncpa [#allocation4 + $0x1], 1 }

</bundles_post_ra>
